<compile_context>
chip_gen: v5e
topology: v5e:2x2
jax: 0.10.0
libtpu: 0.0.40
codegen_flags: <defaults>
</compile_context>

<pallas_src>
import functools

import jax
import jax.numpy as jnp
from jax.experimental import pallas as pl
from jax.experimental.pallas import tpu as pltpu

EPS = 1e-5  # PyTorch BatchNorm2d default


def _conv_tile(xr_ref, w_ref, t, *, kh, tile_h, lanes_out, num_h_tiles):
    """One (tile_h, W*C_out) conv tile = kh lane-dense MXU matmuls, f32 acc."""
    # static row offset when there is a single H tile (demo path), else dynamic
    row0 = 0 if num_h_tiles == 1 else t * tile_h
    acc = jnp.zeros((tile_h, lanes_out), jnp.float32)
    for dy in range(kh):  # static unroll: kh matmuls of (tile_h, Wp*C_in) @ (Wp*C_in, W*C_out)
        slab = xr_ref[0, pl.ds(row0 + dy, tile_h), :]            # (tile_h, Wp*C_in) bf16
        acc += jnp.dot(slab, w_ref[dy], preferred_element_type=jnp.float32)
    return acc


def _make_stats_kernel(kh, tile_h, lanes_out, num_h_tiles):
    """Pass 1: conv tile -> per-image partial sum / sum-of-squares (f32)."""

    def kernel(xr_ref, w_ref, sum_ref, ssq_ref):
        t = pl.program_id(1)

        @pl.when(t == 0)
        def _():
            sum_ref[...] = jnp.zeros_like(sum_ref)
            ssq_ref[...] = jnp.zeros_like(ssq_ref)

        acc = _conv_tile(xr_ref, w_ref, t, kh=kh, tile_h=tile_h,
                         lanes_out=lanes_out, num_h_tiles=num_h_tiles)

        # fold (tile_h, lanes) -> (8, lanes) with static, 8-aligned slices
        s = acc[0:8, :]
        q = s * s
        for g in range(1, tile_h // 8):
            blk = acc[g * 8:(g + 1) * 8, :]
            s = s + blk
            q = q + blk * blk
        sum_ref[...] += s
        ssq_ref[...] += q

    return kernel


def _make_conv_bn_relu_kernel(kh, tile_h, lanes_out, num_h_tiles):
    """Pass 2: recompute conv tile, apply folded BN scale/shift + ReLU."""

    def kernel(xr_ref, w_ref, scale_ref, shift_ref, o_ref):
        t = pl.program_id(1)
        acc = _conv_tile(xr_ref, w_ref, t, kh=kh, tile_h=tile_h,
                         lanes_out=lanes_out, num_h_tiles=num_h_tiles)
        # lane-dense 128-wide f32 store
        o_ref[...] = jnp.maximum(acc * scale_ref[...] + shift_ref[...], 0.0)

    return kernel


@functools.partial(jax.jit, static_argnames=("padding", "tile_h"))
def conv_bn_relu(x_nchw, w_oihw, conv_b, gamma, beta, *, padding=1, tile_h=None):
    del conv_b  # cancelled exactly by training-mode BatchNorm mean subtraction
    N, C_in, H, W = x_nchw.shape
    C_out, _, kh, kw = w_oihw.shape
    assert 2 * padding == kh - 1 == kw - 1, "kernel assumes stride-1 'same' conv"

    if tile_h is None:
        tile_h = H                       # biggest tile that fits VMEM at these sizes
    assert H % tile_h == 0 and tile_h % 8 == 0
    Hp, Wp = H + 2 * padding, W + 2 * padding
    lanes_in, lanes_out = Wp * C_in, W * C_out
    R, M = N * H, N * H * W
    T = H // tile_h

    # ---- glue: NCHW -> padded row layout (N, Hp, Wp*C_in), bf16 staging ----
    x = jnp.transpose(x_nchw, (0, 2, 3, 1))
    xp = jnp.pad(x, ((0, 0), (padding, padding), (padding, padding), (0, 0)))
    xr = xp.reshape(N, Hp, lanes_in).astype(jnp.bfloat16)

    # ---- glue: banded weight w_row[dy, (x+dx)*C_in+ci, x*C_out+co] = w[co,ci,dy,dx]
    w_t = jnp.transpose(w_oihw, (2, 3, 1, 0)).astype(jnp.float32)   # (kh, kw, C_in, C_out)
    rows = []
    for dy in range(kh):
        m = jnp.zeros((lanes_in, lanes_out), jnp.float32)
        for dx in range(kw):
            sel = jnp.eye(Wp, W, k=-dx, dtype=jnp.float32)          # sel[x+dx, x] = 1
            m = m + jnp.einsum("pq,io->piqo", sel, w_t[dy, dx]).reshape(lanes_in, lanes_out)
        rows.append(m)
    w_row = jnp.stack(rows).astype(jnp.bfloat16)                    # (kh, Wp*C_in, W*C_out)

    compiler_params = pltpu.CompilerParams(
        dimension_semantics=("parallel", "arbitrary"),
        vmem_limit_bytes=32 * 1024 * 1024,
    )
    in_specs_common = [
        pl.BlockSpec((1, Hp, lanes_in), lambda n, t: (n, 0, 0)),
        pl.BlockSpec((kh, lanes_in, lanes_out), lambda n, t: (0, 0, 0)),
    ]

    # ---- Pallas pass 1: conv -> per-image batch-stat partials (no y write) ----
    psum, pssq = pl.pallas_call(
        _make_stats_kernel(kh, tile_h, lanes_out, T),
        out_shape=(
            jax.ShapeDtypeStruct((N * 8, lanes_out), jnp.float32),  # partial sums
            jax.ShapeDtypeStruct((N * 8, lanes_out), jnp.float32),  # partial sum-of-squares
        ),
        grid_spec=pltpu.PrefetchScalarGridSpec(
            num_scalar_prefetch=0,
            grid=(N, T),
            in_specs=in_specs_common,
            out_specs=[
                pl.BlockSpec((8, lanes_out), lambda n, t: (n, 0)),
                pl.BlockSpec((8, lanes_out), lambda n, t: (n, 0)),
            ],
        ),
        compiler_params=compiler_params,
    )(xr, w_row)

    # ---- glue: fold training-mode BN (batch mean / biased var) into scale & shift ----
    sums = psum.reshape(-1, W, C_out).sum(axis=(0, 1))
    ssq = pssq.reshape(-1, W, C_out).sum(axis=(0, 1))
    mean = sums / M
    var = jnp.maximum(ssq / M - mean * mean, 0.0)
    inv_std = jax.lax.rsqrt(var + EPS)
    scale = gamma.astype(jnp.float32) * inv_std
    shift = beta.astype(jnp.float32) - mean * scale
    scale_row = jnp.tile(scale, W).reshape(1, lanes_out)            # lane idx = x*C_out + co
    shift_row = jnp.tile(shift, W).reshape(1, lanes_out)

    # ---- Pallas pass 2: recompute conv + normalize + ReLU (no y read) ----
    out = pl.pallas_call(
        _make_conv_bn_relu_kernel(kh, tile_h, lanes_out, T),
        out_shape=jax.ShapeDtypeStruct((R, lanes_out), jnp.float32),
        grid_spec=pltpu.PrefetchScalarGridSpec(
            num_scalar_prefetch=0,
            grid=(N, T),
            in_specs=in_specs_common + [
                pl.BlockSpec((1, lanes_out), lambda n, t: (0, 0)),
                pl.BlockSpec((1, lanes_out), lambda n, t: (0, 0)),
            ],
            out_specs=pl.BlockSpec((tile_h, lanes_out), lambda n, t: (n * T + t, 0)),
        ),
        compiler_params=pltpu.CompilerParams(
            dimension_semantics=("parallel", "parallel"),
            vmem_limit_bytes=32 * 1024 * 1024,
        ),
    )(xr, w_row, scale_row, shift_row)

    # (R, W*C_out) -> (N, H, W, C_out) -> NCHW
    return jnp.transpose(out.reshape(N, H, W, C_out), (0, 3, 1, 2))


def _reference(x, w, b, gamma, beta, padding=1):
    y = jax.lax.conv_general_dilated(
        x, w, window_strides=(1, 1), padding=[(padding, padding)] * 2,
        dimension_numbers=("NCHW", "OIHW", "NCHW"))
    y = y + b.reshape(1, -1, 1, 1)
    mean = jnp.mean(y, axis=(0, 2, 3), keepdims=True)
    var = jnp.var(y, axis=(0, 2, 3), keepdims=True)       # biased, as in torch train-mode BN
    yn = (y - mean) / jnp.sqrt(var + EPS)
    yn = yn * gamma.reshape(1, -1, 1, 1) + beta.reshape(1, -1, 1, 1)
    return jnp.maximum(yn, 0.0)


if __name__ == "__main__":
    key = jax.random.PRNGKey(0)
    kx, kw, kb, kg, kbt = jax.random.split(key, 5)

    N, C_in, H, W = 2, 4, 16, 16
    C_out, ksz, pad = 8, 3, 1

    x = jax.random.normal(kx, (N, C_in, H, W), jnp.float32)
    fan_in = C_in * ksz * ksz
    w = jax.random.normal(kw, (C_out, C_in, ksz, ksz), jnp.float32) / jnp.sqrt(fan_in)
    b = 0.1 * jax.random.normal(kb, (C_out,), jnp.float32)
    gamma = 1.0 + 0.1 * jax.random.normal(kg, (C_out,), jnp.float32)
    beta = 0.1 * jax.random.normal(kbt, (C_out,), jnp.float32)

    out = jax.block_until_ready(conv_bn_relu(x, w, b, gamma, beta, padding=pad))
    ref = jax.block_until_ready(_reference(x, w, b, gamma, beta, padding=pad))

    assert out.shape == (N, C_out, H, W)
    # tolerance reflects bf16 staging of activations/weights (f32 stats & BN math)
    assert bool(jnp.allclose(out, ref, atol=2e-2, rtol=2e-2)), float(jnp.max(jnp.abs(out - ref)))
    print("KERNEL_OK")
</pallas_src>

<mosaic_0001>
module attributes {stable_mosaic.version = 11 : i64} {
  func.func @kernel(%arg0: i32, %arg1: i32, %arg2: memref<1x18x72xbf16, #tpu.memory_space<vmem>>, %arg3: memref<3x72x128xbf16, #tpu.memory_space<vmem>>, %arg4: memref<8x128xf32, #tpu.memory_space<vmem>>, %arg5: memref<8x128xf32, #tpu.memory_space<vmem>>) attributes {dimension_semantics = [#tpu.dimension_semantics<parallel>, #tpu.dimension_semantics<arbitrary>], iteration_bounds = array<i64: 2, 1>, scalar_prefetch = 0 : i64, scratch_operands = 0 : i64, tpu.core_type = #tpu.core_type<tc>, window_params = [{transform_indices = @transform_0, window_bounds = array<i64: 1, 18, 72>}, {pipeline_mode = #tpu.pipeline_mode<synchronous>, transform_indices = @transform_1, window_bounds = array<i64: 3, 72, 128>}, {transform_indices = @transform_2, window_bounds = array<i64: 8, 128>}, {transform_indices = @transform_3, window_bounds = array<i64: 8, 128>}]} {
    %c0_i32 = arith.constant 0 : i32
    %0 = arith.cmpi eq, %arg1, %c0_i32 : i32
    %1 = arith.extui %0 : i1 to i32
    %c0_i32_0 = arith.constant 0 : i32
    %2 = arith.cmpi ne, %1, %c0_i32_0 : i32
    scf.if %2 {
      %cst_27 = arith.constant 0.000000e+00 : f32
      %34 = vector.broadcast %cst_27 : f32 to vector<8x128xf32>
      %c0_28 = arith.constant 0 : index
      %c0_29 = arith.constant 0 : index
      %35 = vector.load %arg4[%c0_28, %c0_29] : memref<8x128xf32, #tpu.memory_space<vmem>>, vector<8x128xf32>
      tpu.vector_store %arg4[%c0_28, %c0_29], %34 {strides = array<i32>} : memref<8x128xf32, #tpu.memory_space<vmem>>, vector<8x128xf32>,
      %cst_30 = arith.constant 0.000000e+00 : f32
      %36 = vector.broadcast %cst_30 : f32 to vector<8x128xf32>
      %c0_31 = arith.constant 0 : index
      %c0_32 = arith.constant 0 : index
      %37 = vector.load %arg5[%c0_31, %c0_32] : memref<8x128xf32, #tpu.memory_space<vmem>>, vector<8x128xf32>
      tpu.vector_store %arg5[%c0_31, %c0_32], %36 {strides = array<i32>} : memref<8x128xf32, #tpu.memory_space<vmem>>, vector<8x128xf32>,
    } else {
    }
    %cst = arith.constant 0.000000e+00 : f32
    %3 = vector.broadcast %cst : f32 to vector<16x128xf32>
    %c0 = arith.constant 0 : index
    %c0_1 = arith.constant 0 : index
    %c0_2 = arith.constant 0 : index
    %4 = vector.load %arg2[%c0, %c0_1, %c0_2] : memref<1x18x72xbf16, #tpu.memory_space<vmem>>, vector<1x16x72xbf16>
    %5 = vector.shape_cast %4 : vector<1x16x72xbf16> to vector<16x72xbf16>
    %c0_3 = arith.constant 0 : index
    %c0_4 = arith.constant 0 : index
    %c0_5 = arith.constant 0 : index
    %6 = vector.load %arg3[%c0_3, %c0_4, %c0_5] : memref<3x72x128xbf16, #tpu.memory_space<vmem>>, vector<1x72x128xbf16>
    %7 = vector.shape_cast %6 : vector<1x72x128xbf16> to vector<72x128xbf16>
    %cst_6 = arith.constant dense<0.000000e+00> : vector<16x128xf32>
    %8 = tpu.matmul %5, %7, %cst_6 {dimension_numbers = #tpu.dot_dimension_numbers<[1], [0], [0], [1], [0, 0, 1, 1], [], []>} : vector<16x72xbf16>, vector<72x128xbf16>, vector<16x128xf32> -> vector<16x128xf32>
    %9 = arith.addf %3, %8 : vector<16x128xf32>
    %c0_7 = arith.constant 0 : index
    %c1 = arith.constant 1 : index
    %c0_8 = arith.constant 0 : index
    %10 = vector.load %arg2[%c0_7, %c1, %c0_8] : memref<1x18x72xbf16, #tpu.memory_space<vmem>>, vector<1x16x72xbf16>
    %11 = vector.shape_cast %10 : vector<1x16x72xbf16> to vector<16x72xbf16>
    %c1_9 = arith.constant 1 : index
    %c0_10 = arith.constant 0 : index
    %c0_11 = arith.constant 0 : index
    %12 = vector.load %arg3[%c1_9, %c0_10, %c0_11] : memref<3x72x128xbf16, #tpu.memory_space<vmem>>, vector<1x72x128xbf16>
    %13 = vector.shape_cast %12 : vector<1x72x128xbf16> to vector<72x128xbf16>
    %cst_12 = arith.constant dense<0.000000e+00> : vector<16x128xf32>
    %14 = tpu.matmul %11, %13, %cst_12 {dimension_numbers = #tpu.dot_dimension_numbers<[1], [0], [0], [1], [0, 0, 1, 1], [], []>} : vector<16x72xbf16>, vector<72x128xbf16>, vector<16x128xf32> -> vector<16x128xf32>
    %15 = arith.addf %9, %14 : vector<16x128xf32>
    %c0_13 = arith.constant 0 : index
    %c2 = arith.constant 2 : index
    %c0_14 = arith.constant 0 : index
    %16 = vector.load %arg2[%c0_13, %c2, %c0_14] : memref<1x18x72xbf16, #tpu.memory_space<vmem>>, vector<1x16x72xbf16>
    %17 = vector.shape_cast %16 : vector<1x16x72xbf16> to vector<16x72xbf16>
    %c2_15 = arith.constant 2 : index
    %c0_16 = arith.constant 0 : index
    %c0_17 = arith.constant 0 : index
    %18 = vector.load %arg3[%c2_15, %c0_16, %c0_17] : memref<3x72x128xbf16, #tpu.memory_space<vmem>>, vector<1x72x128xbf16>
    %19 = vector.shape_cast %18 : vector<1x72x128xbf16> to vector<72x128xbf16>
    %cst_18 = arith.constant dense<0.000000e+00> : vector<16x128xf32>
    %20 = tpu.matmul %17, %19, %cst_18 {dimension_numbers = #tpu.dot_dimension_numbers<[1], [0], [0], [1], [0, 0, 1, 1], [], []>} : vector<16x72xbf16>, vector<72x128xbf16>, vector<16x128xf32> -> vector<16x128xf32>
    %21 = arith.addf %15, %20 : vector<16x128xf32>
    %22 = vector.extract_strided_slice %21 {offsets = [0, 0], sizes = [8, 128], strides = [1, 1]} : vector<16x128xf32> to vector<8x128xf32>
    %23 = arith.mulf %22, %22 : vector<8x128xf32>
    %24 = vector.extract_strided_slice %21 {offsets = [8, 0], sizes = [8, 128], strides = [1, 1]} : vector<16x128xf32> to vector<8x128xf32>
    %25 = arith.addf %22, %24 : vector<8x128xf32>
    %26 = arith.mulf %24, %24 : vector<8x128xf32>
    %27 = arith.addf %23, %26 : vector<8x128xf32>
    %c0_19 = arith.constant 0 : index
    %c0_20 = arith.constant 0 : index
    %28 = vector.load %arg4[%c0_19, %c0_20] : memref<8x128xf32, #tpu.memory_space<vmem>>, vector<8x128xf32>
    %29 = arith.addf %28, %25 : vector<8x128xf32>
    %c0_21 = arith.constant 0 : index
    %c0_22 = arith.constant 0 : index
    %30 = vector.load %arg4[%c0_21, %c0_22] : memref<8x128xf32, #tpu.memory_space<vmem>>, vector<8x128xf32>
    tpu.vector_store %arg4[%c0_21, %c0_22], %29 {strides = array<i32>} : memref<8x128xf32, #tpu.memory_space<vmem>>, vector<8x128xf32>,
    %c0_23 = arith.constant 0 : index
    %c0_24 = arith.constant 0 : index
    %31 = vector.load %arg5[%c0_23, %c0_24] : memref<8x128xf32, #tpu.memory_space<vmem>>, vector<8x128xf32>
    %32 = arith.addf %31, %27 : vector<8x128xf32>
    %c0_25 = arith.constant 0 : index
    %c0_26 = arith.constant 0 : index
    %33 = vector.load %arg5[%c0_25, %c0_26] : memref<8x128xf32, #tpu.memory_space<vmem>>, vector<8x128xf32>
    tpu.vector_store %arg5[%c0_25, %c0_26], %32 {strides = array<i32>} : memref<8x128xf32, #tpu.memory_space<vmem>>, vector<8x128xf32>,
    return
  }
  func.func @transform_0(%arg0: i32, %arg1: i32) -> (i32, i32, i32) {
    %c0_i32 = arith.constant 0 : i32
    %c0_i32_0 = arith.constant 0 : i32
    %c0_i32_1 = arith.constant 0 : i32
    return %arg0, %c0_i32, %c0_i32_0 : i32, i32, i32
  }
  func.func @transform_1(%arg0: i32, %arg1: i32) -> (i32, i32, i32) {
    %c0_i32 = arith.constant 0 : i32
    %c0_i32_0 = arith.constant 0 : i32
    %c0_i32_1 = arith.constant 0 : i32
    %c0_i32_2 = arith.constant 0 : i32
    return %c0_i32, %c0_i32_0, %c0_i32_1 : i32, i32, i32
  }
  func.func @transform_2(%arg0: i32, %arg1: i32) -> (i32, i32) {
    %c0_i32 = arith.constant 0 : i32
    %c0_i32_0 = arith.constant 0 : i32
    return %arg0, %c0_i32 : i32, i32
  }
  func.func @transform_3(%arg0: i32, %arg1: i32) -> (i32, i32) {
    %c0_i32 = arith.constant 0 : i32
    %c0_i32_0 = arith.constant 0 : i32
    return %arg0, %c0_i32 : i32, i32
  }
}

module attributes {stable_mosaic.version = 11 : i64} {
  func.func @kernel(%arg0: i32, %arg1: i32, %arg2: memref<1x18x72xbf16, #tpu.memory_space<vmem>>, %arg3: memref<3x72x128xbf16, #tpu.memory_space<vmem>>, %arg4: memref<1x128xf32, #tpu.memory_space<vmem>>, %arg5: memref<1x128xf32, #tpu.memory_space<vmem>>, %arg6: memref<16x128xf32, #tpu.memory_space<vmem>>) attributes {dimension_semantics = [#tpu.dimension_semantics<parallel>, #tpu.dimension_semantics<parallel>], iteration_bounds = array<i64: 2, 1>, scalar_prefetch = 0 : i64, scratch_operands = 0 : i64, tpu.core_type = #tpu.core_type<tc>, window_params = [{transform_indices = @transform_0, window_bounds = array<i64: 1, 18, 72>}, {pipeline_mode = #tpu.pipeline_mode<synchronous>, transform_indices = @transform_1, window_bounds = array<i64: 3, 72, 128>}, {pipeline_mode = #tpu.pipeline_mode<synchronous>, transform_indices = @transform_2, window_bounds = array<i64: 1, 128>}, {pipeline_mode = #tpu.pipeline_mode<synchronous>, transform_indices = @transform_3, window_bounds = array<i64: 1, 128>}, {transform_indices = @transform_4, window_bounds = array<i64: 16, 128>}]} {
    %cst = arith.constant 0.000000e+00 : f32
    %0 = vector.broadcast %cst : f32 to vector<16x128xf32>
    %c0 = arith.constant 0 : index
    %c0_0 = arith.constant 0 : index
    %c0_1 = arith.constant 0 : index
    %1 = vector.load %arg2[%c0, %c0_0, %c0_1] : memref<1x18x72xbf16, #tpu.memory_space<vmem>>, vector<1x16x72xbf16>
    %2 = vector.shape_cast %1 : vector<1x16x72xbf16> to vector<16x72xbf16>
    %c0_2 = arith.constant 0 : index
    %c0_3 = arith.constant 0 : index
    %c0_4 = arith.constant 0 : index
    %3 = vector.load %arg3[%c0_2, %c0_3, %c0_4] : memref<3x72x128xbf16, #tpu.memory_space<vmem>>, vector<1x72x128xbf16>
    %4 = vector.shape_cast %3 : vector<1x72x128xbf16> to vector<72x128xbf16>
    %cst_5 = arith.constant dense<0.000000e+00> : vector<16x128xf32>
    %5 = tpu.matmul %2, %4, %cst_5 {dimension_numbers = #tpu.dot_dimension_numbers<[1], [0], [0], [1], [0, 0, 1, 1], [], []>} : vector<16x72xbf16>, vector<72x128xbf16>, vector<16x128xf32> -> vector<16x128xf32>
    %6 = arith.addf %0, %5 : vector<16x128xf32>
    %c0_6 = arith.constant 0 : index
    %c1 = arith.constant 1 : index
    %c0_7 = arith.constant 0 : index
    %7 = vector.load %arg2[%c0_6, %c1, %c0_7] : memref<1x18x72xbf16, #tpu.memory_space<vmem>>, vector<1x16x72xbf16>
    %8 = vector.shape_cast %7 : vector<1x16x72xbf16> to vector<16x72xbf16>
    %c1_8 = arith.constant 1 : index
    %c0_9 = arith.constant 0 : index
    %c0_10 = arith.constant 0 : index
    %9 = vector.load %arg3[%c1_8, %c0_9, %c0_10] : memref<3x72x128xbf16, #tpu.memory_space<vmem>>, vector<1x72x128xbf16>
    %10 = vector.shape_cast %9 : vector<1x72x128xbf16> to vector<72x128xbf16>
    %cst_11 = arith.constant dense<0.000000e+00> : vector<16x128xf32>
    %11 = tpu.matmul %8, %10, %cst_11 {dimension_numbers = #tpu.dot_dimension_numbers<[1], [0], [0], [1], [0, 0, 1, 1], [], []>} : vector<16x72xbf16>, vector<72x128xbf16>, vector<16x128xf32> -> vector<16x128xf32>
    %12 = arith.addf %6, %11 : vector<16x128xf32>
    %c0_12 = arith.constant 0 : index
    %c2 = arith.constant 2 : index
    %c0_13 = arith.constant 0 : index
    %13 = vector.load %arg2[%c0_12, %c2, %c0_13] : memref<1x18x72xbf16, #tpu.memory_space<vmem>>, vector<1x16x72xbf16>
    %14 = vector.shape_cast %13 : vector<1x16x72xbf16> to vector<16x72xbf16>
    %c2_14 = arith.constant 2 : index
    %c0_15 = arith.constant 0 : index
    %c0_16 = arith.constant 0 : index
    %15 = vector.load %arg3[%c2_14, %c0_15, %c0_16] : memref<3x72x128xbf16, #tpu.memory_space<vmem>>, vector<1x72x128xbf16>
    %16 = vector.shape_cast %15 : vector<1x72x128xbf16> to vector<72x128xbf16>
    %cst_17 = arith.constant dense<0.000000e+00> : vector<16x128xf32>
    %17 = tpu.matmul %14, %16, %cst_17 {dimension_numbers = #tpu.dot_dimension_numbers<[1], [0], [0], [1], [0, 0, 1, 1], [], []>} : vector<16x72xbf16>, vector<72x128xbf16>, vector<16x128xf32> -> vector<16x128xf32>
    %18 = arith.addf %12, %17 : vector<16x128xf32>
    %c0_18 = arith.constant 0 : index
    %c0_19 = arith.constant 0 : index
    %19 = vector.load %arg4[%c0_18, %c0_19] : memref<1x128xf32, #tpu.memory_space<vmem>>, vector<1x128xf32>
    %20 = vector.broadcast %19 : vector<1x128xf32> to vector<16x128xf32>
    %21 = arith.mulf %18, %20 : vector<16x128xf32>
    %c0_20 = arith.constant 0 : index
    %c0_21 = arith.constant 0 : index
    %22 = vector.load %arg5[%c0_20, %c0_21] : memref<1x128xf32, #tpu.memory_space<vmem>>, vector<1x128xf32>
    %23 = vector.broadcast %22 : vector<1x128xf32> to vector<16x128xf32>
    %24 = arith.addf %21, %23 : vector<16x128xf32>
    %cst_22 = arith.constant 0.000000e+00 : f32
    %25 = vector.broadcast %cst_22 : f32 to vector<16x128xf32>
    %26 = arith.maximumf %24, %25 : vector<16x128xf32>
    %c0_23 = arith.constant 0 : index
    %c0_24 = arith.constant 0 : index
    %27 = vector.load %arg6[%c0_23, %c0_24] : memref<16x128xf32, #tpu.memory_space<vmem>>, vector<16x128xf32>
    tpu.vector_store %arg6[%c0_23, %c0_24], %26 {strides = array<i32>} : memref<16x128xf32, #tpu.memory_space<vmem>>, vector<16x128xf32>,
    return
  }
  func.func @transform_0(%arg0: i32, %arg1: i32) -> (i32, i32, i32) {
    %c0_i32 = arith.constant 0 : i32
    %c0_i32_0 = arith.constant 0 : i32
    %c0_i32_1 = arith.constant 0 : i32
    return %arg0, %c0_i32, %c0_i32_0 : i32, i32, i32
  }
  func.func @transform_1(%arg0: i32, %arg1: i32) -> (i32, i32, i32) {
    %c0_i32 = arith.constant 0 : i32
    %c0_i32_0 = arith.constant 0 : i32
    %c0_i32_1 = arith.constant 0 : i32
    %c0_i32_2 = arith.constant 0 : i32
    return %c0_i32, %c0_i32_0, %c0_i32_1 : i32, i32, i32
  }
  func.func @transform_2(%arg0: i32, %arg1: i32) -> (i32, i32) {
    %c0_i32 = arith.constant 0 : i32
    %c0_i32_0 = arith.constant 0 : i32
    %c0_i32_1 = arith.constant 0 : i32
    return %c0_i32, %c0_i32_0 : i32, i32
  }
  func.func @transform_3(%arg0: i32, %arg1: i32) -> (i32, i32) {
    %c0_i32 = arith.constant 0 : i32
    %c0_i32_0 = arith.constant 0 : i32
    %c0_i32_1 = arith.constant 0 : i32
    return %c0_i32, %c0_i32_0 : i32, i32
  }
  func.func @transform_4(%arg0: i32, %arg1: i32) -> (i32, i32) {
    %c1_i32 = arith.constant 1 : i32
    %0 = arith.muli %arg0, %c1_i32 : i32
    %1 = arith.addi %0, %arg1 : i32
    %c0_i32 = arith.constant 0 : i32
    %c0_i32_0 = arith.constant 0 : i32
    return %1, %c0_i32 : i32, i32
  }
}

</mosaic_0001>

<bundles_post_ra>
// kernel: tile.13
= control target key start
LH: loop header
LB: loop body
LE: loop exit
PB: predicated region body
PF: predicated region fallthrough
CT: control target
= control target key end

     0   :  { %s28_s0 = inlined_call_operand.vmem [shape: f32[8], index: 0, kind: input, shape index: {}]   ;;  %s29_s1 = inlined_call_operand.vmem [shape: f32[16,8], index: 1, kind: output, shape index: {}]  }
   0x1   :  { %v4_v0 = vld [vmem:[%s28_s0] ss:$0 sm:$0xff] }
   0x2   :  { %5 = vst [vmem:[%s29_s1] sm:$0xff] %v4_v0 }
   0x3   :  { %8 = vst [vmem:[%s29_s1 + $0x8] sm:$0xff] %v4_v0 }

// kernel: tile.14
= control target key start
LH: loop header
LB: loop body
LE: loop exit
PB: predicated region body
PF: predicated region fallthrough
CT: control target
= control target key end

     0   :  { %s131_s10 = smov 120   ;;  %s132_s11 = smov 104   ;;  %vm3_vm0 = vcmask 64512   ;;  %vm9_vm1 = vcmask 1048512   ;;  %vm15_vm2 = vcmask 982912   ;;  %vm21_vm3 = vcmask 917312   ;;  %s207_s0 = inlined_call_operand.vmem [shape: f32[16,8], index: 0, kind: input, shape index: {}]   ;;  %s208_s1 = inlined_call_operand.vmem [shape: f32[1,128], index: 1, kind: output, shape index: {}]  }
   0x1   :  { %v101_v0 = vld [vmem:[%s207_s0 + $0xf] sm:$0x1]   ;;  %v103_v1 = vld [vmem:[%s207_s0 + $0xd] sm:$0x1]   ;;  %v105_v2 = vld [vmem:[%s207_s0 + $0xb] sm:$0x1]  }
   0x2   :  { %7 = vrot.lane.b32.xlu0 %v101_v0, %s131_s10  ;;  %19 = vrot.lane.b32.xlu1 %v103_v1, %s132_s11  ;;  %s133_s14 = smov 88   ;;  %v102_v3 = vld [vmem:[%s207_s0 + $0xe] sm:$0x1]   ;;  %v104_v4 = vld [vmem:[%s207_s0 + $0xc] sm:$0x1]   ;;  %s134_s19 = smov 112  }
   0x3   :  { %31 = vrot.lane.b32.xlu2 %v105_v2, %s133_s14  ;;  %s135_s20 = smov 96   ;;  %v106_v5 = vld [vmem:[%s207_s0 + $0xa] sm:$0x1]   ;;  %s136_s23 = smov 80   ;;  %v107_v6 = vld [vmem:[%s207_s0 + $0x9] sm:$0x1]  }
   0x4   :  { %v108_v7 = vld [vmem:[%s207_s0 + $0x8] sm:$0x1]   ;;  %s137_s28 = smov 72   ;;  %s138_s29 = smov 64   ;;  %v109_v8 = vld [vmem:[%s207_s0 + $0x7] sm:$0x1]  }
   0x5   :  { %s139_s3 = smov 56   ;;  %v110_v9 = vld [vmem:[%s207_s0 + $0x6] sm:$0x1]   ;;  %v111_v10 = vld [vmem:[%s207_s0 + $0x5] sm:$0x1]   ;;  %s140_s8 = smov 48  }
   0x6   :  { %s141_s9 = smov 40   ;;  %v112_v11 = vld [vmem:[%s207_s0 + $0x4] sm:$0x1]   ;;  %s142_s12 = smov 32   ;;  %v113_v12 = vld [vmem:[%s207_s0 + $0x3] sm:$0x1]  }
   0x7   :  { %v114_v13 = vld [vmem:[%s207_s0 + $0x2] sm:$0x1]   ;;  %s143_s17 = smov 24   ;;  %s144_s18 = smov 16   ;;  %v115_v14 = vld [vmem:[%s207_s0 + $0x1] sm:$0x1]  }
   0x8   :  { %s145_s21 = smov 8   ;;  %v2_v15 = vld [vmem:[%s207_s0] sm:$0x1]   ;;  %vm27_vm4 = vcmask 851712   ;;  %vm33_vm5 = vcmask 786112   ;;  %vm39_vm6 = vcmask 720512  }
   0x9   :  { %4 = vst.msk [vmem:[#allocation0] sm:$0x1] %vm3_vm0, %v2_v15   ;;  %vm45_vm7 = vcmask 654912   ;;  %vm51_vm8 = vcmask 589312   ;;  %vm57_vm9 = vcmask 523712   ;;  %vm63_vm10 = vcmask 458112  }
   0xa   :  { %13 = vrot.lane.b32.xlu0 %v102_v3, %s134_s19  ;;  %25 = vrot.lane.b32.xlu1 %v104_v4, %s135_s20  ;;  %vm69_vm11 = vcmask 392512   ;;  %vm75_vm12 = vcmask 326912   ;;  %vm81_vm13 = vcmask 261312   ;;  %vm87_vm14 = vcmask 195712  }
   0xb   :  { %37 = vrot.lane.b32.xlu2 %v106_v5, %s136_s23  ;;  %vm93_vm15 = vcmask 130112  }
  0x12   :  { %43 = vrot.lane.b32.xlu0 %v107_v6, %s137_s28  ;;  %49 = vrot.lane.b32.xlu1 %v108_v7, %s138_s29 }
  0x13   :  { %55 = vrot.lane.b32.xlu2 %v109_v8, %s139_s3 }
  0x1a   :  { %61 = vrot.lane.b32.xlu0 %v110_v9, %s140_s8  ;;  %67 = vrot.lane.b32.xlu1 %v111_v10, %s141_s9 }
  0x1b   :  { %73 = vrot.lane.b32.xlu2 %v112_v11, %s142_s12 }
  0x22   :  { %79 = vrot.lane.b32.xlu0 %v113_v12, %s143_s17  ;;  %85 = vrot.lane.b32.xlu1 %v114_v13, %s144_s18 }
  0x23   :  { %91 = vrot.lane.b32.xlu2 %v115_v14, %s145_s21 }
  0x5d   :  { %v32_v16 = vpop.permute.xlu2 %31  }
  0x65   :  { %v38_v17 = vpop.permute.xlu2 %37  }
  0x6d   :  { %v56_v18 = vpop.permute.xlu2 %55  }
  0x74   :  { %v8_v19 = vpop.permute.xlu0 %7   ;;  %v20_v20 = vpop.permute.xlu1 %19  }
  0x75   :  { %10 = vst.msk [vmem:[#allocation0] sm:$0x1] %vm9_vm1, %v8_v19   ;;  %v74_v21 = vpop.permute.xlu2 %73  }
  0x7c   :  { %v14_v22 = vpop.permute.xlu0 %13   ;;  %v26_v23 = vpop.permute.xlu1 %25  }
  0x7d   :  { %16 = vst.msk [vmem:[#allocation0] sm:$0x1] %vm15_vm2, %v14_v22   ;;  %v92_v24 = vpop.permute.xlu2 %91  }
  0x7e   :  { %22 = vst.msk [vmem:[#allocation0] sm:$0x1] %vm21_vm3, %v20_v20  }
  0x7f   :  { %28 = vst.msk [vmem:[#allocation0] sm:$0x1] %vm27_vm4, %v26_v23  }
  0x80   :  { %34 = vst.msk [vmem:[#allocation0] sm:$0x1] %vm33_vm5, %v32_v16  }
  0x81   :  { %40 = vst.msk [vmem:[#allocation0] sm:$0x1] %vm39_vm6, %v38_v17  }
  0x84   :  { %v44_v25 = vpop.permute.xlu0 %43   ;;  %v50_v26 = vpop.permute.xlu1 %49  }
  0x85   :  { %46 = vst.msk [vmem:[#allocation0] sm:$0x1] %vm45_vm7, %v44_v25  }
  0x86   :  { %52 = vst.msk [vmem:[#allocation0] sm:$0x1] %vm51_vm8, %v50_v26  }
  0x87   :  { %58 = vst.msk [vmem:[#allocation0] sm:$0x1] %vm57_vm9, %v56_v18  }
  0x8c   :  { %v62_v27 = vpop.permute.xlu0 %61   ;;  %v68_v28 = vpop.permute.xlu1 %67  }
  0x8d   :  { %64 = vst.msk [vmem:[#allocation0] sm:$0x1] %vm63_vm10, %v62_v27  }
  0x8e   :  { %70 = vst.msk [vmem:[#allocation0] sm:$0x1] %vm69_vm11, %v68_v28  }
  0x8f   :  { %76 = vst.msk [vmem:[#allocation0] sm:$0x1] %vm75_vm12, %v74_v21  }
  0x94   :  { %v80_v29 = vpop.permute.xlu0 %79   ;;  %v86_v30 = vpop.permute.xlu1 %85  }
  0x95   :  { %82 = vst.msk [vmem:[#allocation0] sm:$0x1] %vm81_vm13, %v80_v29  }
  0x96   :  { %88 = vst.msk [vmem:[#allocation0] sm:$0x1] %vm87_vm14, %v86_v30  }
  0x97   :  { %94 = vst.msk [vmem:[#allocation0] sm:$0x1] %vm93_vm15, %v92_v24  }
  0x9e   :  { %v97_v31 = vld [vmem:[#allocation0] sm:$0x1] }
  0x9f   :  { %100 = vst [vmem:[%s208_s1] sm:$0x1] %v97_v31 }

// kernel: conv_bn_relu.2
= control target key start
LH: loop header
LB: loop body
LE: loop exit
PB: predicated region body
PF: predicated region fallthrough
CT: control target
= control target key end

     0   :  { %s674_s12 = smov 0   ;;  %s676_s13 = smov 0   ;;  %s759_s0 = inlined_call_operand.vmem [shape: bf16[2,18,72], index: 0, kind: input, shape index: {}]   ;;  %s760_s1 = inlined_call_operand.vmem [shape: bf16[3,72,128], index: 1, kind: input, shape index: {}]   ;;  %s761_s2 = inlined_call_operand.vmem [shape: f32[16,128], index: 2, kind: output, shape index: {0}]   ;;  %s762_s3 = inlined_call_operand.vmem [shape: f32[16,128], index: 3, kind: output, shape index: {1}]  }
   0x1   :  { %s678_s14 = smov 0  }
   0x2 LB: > { %s26_s15 = sadd.s32 1, %s648_s13  ;;  %p510_p0 = scmp.ge.s32.totalorder %s652_s14, 1  ;;  %s652_s14 = sphi %s678_s14, %s14_s14   ;;  %s648_s13 = sphi %s676_s13, %s764_s13   ;;  %s644_s12 = sphi %s674_s12, %s763_s12  }
   0x3   : > { %p28_p1 = scmp.ge.s32.totalorder %s26_s15, 2  ;;  %p152_p2 = scmp.lt.s32.totalorder %s652_s14, 3 }
   0x5   : > { %s766_s15 = smov (%p28_p1, %s26_s15), 0  ;;  %p153_p3 = pnand %p510_p0, %p152_p2 }
   0x6   : > { %p179_p4 = scmp.lt.s32.totalorder (!%p153_p3), %s644_s12, 1 }
   0x7   : > { %156 = sbr.rel (%p153_p3) target bundleno = 185 (0xb9), region = 28 }
   0xc   : > { %v522_v0 = vld [vmem:[%s760_s1 + $0x44] sm:$0xf]  ;;  %v209_v1 = vld [vmem:[%s760_s1 + $0x20] sm:$0xf]  ;;  %v565_v4 = vld [vmem:[%s760_s1 + $0x68] sm:$0xf] }
   0xd   : > { %v259_v2 = vunpack.c.l.b16 %v522_v0  ;;  %v308_v3 = vunpack.c.l.b16 %v209_v1  ;;  %vm273_vm0 = vcmask 1043456   ;;  %v372_v5 = vunpack.c.l.b16 %v565_v4  ;;  %s768_s12 = smov (!%p179_p4, %s644_s12), 1  ;;  %v592_v12 = vld [vmem:[%s760_s1 + $0x3c] sm:$0xff]  ;;  %v591_v18 = vld [vmem:[%s760_s1 + $0x34] sm:$0xff]  ;;  %v590_v25 = vld [vmem:[%s760_s1 + $0x2c] sm:$0xff] }
   0xe   : > { %s604_s22 = smul.u32 12, %s768_s12  ;;  %v588_v13 = vld [vmem:[%s760_s1 + $0x18] sm:$0xff]  ;;  %v596_v14 = vld [vmem:[%s760_s1 + $0x60] sm:$0xff]  ;;  %v587_v19 = vld [vmem:[%s760_s1 + $0x10] sm:$0xff]  ;;  %vm229_vm1 = vsmask.f32 7424 }
   0xf   : > { %v264_v6 = vpack.c.b16 %v259_v2, %v259_v2  ;;  %v313_v7 = vpack.c.b16 %v308_v3, %v308_v3  ;;  %v377_v8 = vpack.c.b16 %v372_v5, %v372_v5  ;;  %v595_v21 = vld [vmem:[%s760_s1 + $0x58] sm:$0xff]  ;;  %v586_v26 = vld [vmem:[%s760_s1 + $0x8] sm:$0xff]  ;;  %v594_v30 = vld [vmem:[%s760_s1 + $0x50] sm:$0xff]  ;;  %vm351_vm2 = vcmask 1046528   ;;  %s512_s27 = sshll.u32 %s768_s12, 3 }
  0x10   : > { %s183_s4 = scalar_lea.vmem %s759_s0, %s604_s22  ;;  %v589_v32 = vld [vmem:[%s760_s1 + $0x24] sm:$0xff]  ;;  %vm269_vm3 = vcmask 588800   ;;  %s187_s30 = scalar_lea.vmem %s761_s2, %s512_s27 }
  0x11   : > { %v275_v9 = vsel %vm273_vm0, %v264_v6, 0  ;;  %v321_v10 = vsel %vm273_vm0, %v313_v7, 0  ;;  %v386_v11 = vsel %vm273_vm0, %v377_v8, 0  ;;  %v598_v15 = vld [vmem:[%s183_s4] sm:$0xff]   ;;  %v210_v16 = vld [vmem:[%s183_s4 + $0x8] sm:$0x1]  ;;  %s191_s6 = scalar_lea.vmem %s762_s3, %s512_s27 }
  0x12   : > { %280 = vmatpush.bf16.msra.mxu0 %v275_v9  ;;  %326 = vmatpush.bf16.msra.mxu1 %v321_v10  ;;  %v226_v17 = vunpack.c.l.b16 %v210_v16  ;;  %v233_v20 = vshll.u32 %v598_v15, 16  ;;  %v601_v23 = vld [vmem:[%s183_s4] sm:$0xf0]  ;;  %v602_v24 = vld [vmem:[%s183_s4] sm:$0xe]  ;;  %v231_v27 = vshrl.u32 %v598_v15, 16 }
  0x13   : > { %391 = vmatpush.bf16.msra.mxu2 %v386_v11  ;;  %v603_v31 = vor.u32 %v602_v24, %v601_v23  ;;  %v585_v33 = vld [vmem:[%s760_s1] sm:$0xff]  ;;  %v593_v36 = vld [vmem:[%s760_s1 + $0x48] sm:$0xff] }
  0x14   : > { %v228_v22 = vpack.c.b16 %v226_v17, %v226_v17  ;;  %v235_v28 = vrot.slane %v233_v20, 1 }
  0x15   : > { %v352_v37 = vrot.slane %v603_v31, 1 }
  0x16   : > { %281 = vmatpush.bf16.msra.mxu0 %v592_v12  ;;  %327 = vmatpush.bf16.msra.mxu1 %v588_v13  ;;  %v238_v29 = vshll.u32 %v228_v22, 16  ;;  %v236_v34 = vor.u32 %v235_v28, %v231_v27  ;;  %v353_v38 = vrot.slane %v228_v22, 1 }
  0x17   : > { %392 = vmatpush.bf16.msra.mxu2 %v596_v14 }
  0x18   : > { %v240_v35 = vrot.slane %v238_v29, 1  ;;  %v354_v40 = vsel %vm351_vm2, %v352_v37, %v353_v38 }
  0x1a   : > { %282 = vmatpush.bf16.msra.mxu0 %v591_v18  ;;  %328 = vmatpush.bf16.msra.mxu1 %v587_v19  ;;  %v241_v39 = vsel %vm229_vm1, %v236_v34, %v240_v35 }
  0x1b   : > { %393 = vmatpush.bf16.msra.mxu2 %v595_v21 }
  0x1e   : > { %283 = vmatpush.bf16.msra.mxu0 %v590_v25  ;;  %329 = vmatpush.bf16.msra.mxu1 %v586_v26 }
  0x1f   : > { %394 = vmatpush.bf16.msra.mxu2 %v594_v30 }
  0x22   : > { %284 = vmatpush.bf16.msra.mxu0 %v589_v32  ;;  %330 = vmatpush.bf16.msra.mxu1 %v585_v33 }
  0x23   : > { %395 = vmatpush.bf16.msra.mxu2 %v593_v36 }
  0x25   : > { %539 = vmatmul.msk.bf16.vlgmr.msra.gmra.mxu0 %vm269_vm3, %v241_v39  ;;  %556 = vmatmul.msk.bf16.vlgmr.msra.gmra.mxu1 %vm269_vm3, %v598_v15 }
  0x26   : > { %582 = vmatmul.msk.bf16.vlgmr.msra.gmra.mxu2 %vm269_vm3, %v354_v40 }
  0xa2   : > { %v286_v41 = vpop.f32.mrf.mxu0  ;;  %v332_v42 = vpop.f32.mrf.mxu1 }
  0xa3   : > { %v333_v44 = vadd.f32 %v332_v42, %v286_v41 }
  0xa9   : > { %v397_v43 = vpop.f32.mrf.mxu2 }
  0xaa   : > { %v288_v45 = vpop.f32.mrf.mxu0  ;;  %v334_v46 = vpop.f32.mrf.mxu1  ;;  %v402_v47 = vadd.f32 %v397_v43, %v333_v44 }
  0xab   : > { %v335_v48 = vadd.f32 %v334_v46, %v288_v45 }
  0xac   : > { %v404_v51 = vmul.f32 %v402_v47, %v402_v47 }
  0xb1   : > { %v399_v49 = vpop.f32.mrf.mxu2 }
  0xb2   : > { %v403_v50 = vadd.f32 %v399_v49, %v335_v48 }
  0xb4   : > { %v405_v52 = vadd.f32 %v403_v50, %v402_v47  ;;  %v406_v53 = vmul.f32 %v403_v50, %v403_v50 }
  0xb6   : > { %v407_v54 = vadd.f32 %v406_v53, %v404_v51  ;;  %410 = vst [vmem:[%s187_s30] sm:$0xff] %v405_v52 }
  0xb8   : > { %413 = vst [vmem:[%s191_s6] sm:$0xff] %v407_v54 }
  0xb9 PF: > { %s14_s14 = sadd.s32 1, %s652_s14   ;;  %s763_s12 = smov %s648_s13 }
  0xba   : > { %p11_p5 = scmp.ge.s32.totalorder %s14_s14, 4   ;;  %s764_s13 = smov %s766_s15 }
  0xbc   :  { %13 = sbr.rel (!%p11_p5) target bundleno = 2 (0x2), region = 76 }

// kernel: conv_bn_relu.3
= control target key start
LH: loop header
LB: loop body
LE: loop exit
PB: predicated region body
PF: predicated region fallthrough
CT: control target
= control target key end

     0   :  { %s680_s15 = smov 0   ;;  %s682_s16 = smov 0   ;;  %s769_s0 = inlined_call_operand.vmem [shape: bf16[2,18,72], index: 0, kind: input, shape index: {}]   ;;  %s770_s1 = inlined_call_operand.vmem [shape: bf16[3,72,128], index: 1, kind: input, shape index: {}]   ;;  %s771_s2 = inlined_call_operand.vmem [shape: f32[1,128], index: 2, kind: input, shape index: {}]   ;;  %s772_s3 = inlined_call_operand.vmem [shape: f32[1,128], index: 3, kind: input, shape index: {}]   ;;  %s773_s4 = inlined_call_operand.vmem [shape: f32[32,128], index: 4, kind: output, shape index: {}]  }
   0x1   :  { %s684_s17 = smov 0  }
   0x2 LB: > { %s26_s18 = sadd.s32 1, %s649_s16  ;;  %p510_p0 = scmp.ge.s32.totalorder %s653_s17, 1  ;;  %s653_s17 = sphi %s684_s17, %s14_s17   ;;  %s649_s16 = sphi %s682_s16, %s775_s16   ;;  %s645_s15 = sphi %s680_s15, %s774_s15  }
   0x3   : > { %p28_p1 = scmp.ge.s32.totalorder %s26_s18, 2  ;;  %p176_p2 = scmp.lt.s32.totalorder %s653_s17, 3 }
   0x5   : > { %s777_s18 = smov (%p28_p1, %s26_s18), 0  ;;  %p177_p3 = pnand %p510_p0, %p176_p2 }
   0x6   : > { %p203_p4 = scmp.lt.s32.totalorder (!%p177_p3), %s645_s15, 1  ;;  %s512_s6 = sshll.u32 (!%p177_p3), %s645_s15, 1 }
   0x7   : > { %180 = sbr.rel (%p177_p3) target bundleno = 187 (0xbb), region = 36  ;;  %p210_p5 = scmp.lt.s32.totalorder (!%p177_p3), %s512_s6, 3 }
   0xc   : > { %v522_v0 = vld [vmem:[%s770_s1 + $0x44] sm:$0xf]  ;;  %v227_v1 = vld [vmem:[%s770_s1 + $0x20] sm:$0xf]  ;;  %v565_v4 = vld [vmem:[%s770_s1 + $0x68] sm:$0xf] }
   0xd   : > { %v277_v2 = vunpack.c.l.b16 %v522_v0  ;;  %v326_v3 = vunpack.c.l.b16 %v227_v1  ;;  %vm291_vm0 = vcmask 1043456   ;;  %v390_v5 = vunpack.c.l.b16 %v565_v4  ;;  %s204_s25 = scalar_select %p203_p4, %s645_s15, 1  ;;  %v592_v12 = vld [vmem:[%s770_s1 + $0x3c] sm:$0xff]  ;;  %v591_v18 = vld [vmem:[%s770_s1 + $0x34] sm:$0xff]  ;;  %v590_v25 = vld [vmem:[%s770_s1 + $0x2c] sm:$0xff] }
   0xe   : > { %v588_v13 = vld [vmem:[%s770_s1 + $0x18] sm:$0xff]  ;;  %v596_v14 = vld [vmem:[%s770_s1 + $0x60] sm:$0xff]  ;;  %v587_v19 = vld [vmem:[%s770_s1 + $0x10] sm:$0xff]  ;;  %vm247_vm1 = vsmask.f32 7424  ;;  %vm369_vm2 = vcmask 1046528  }
   0xf   : > { %v282_v6 = vpack.c.b16 %v277_v2, %v277_v2  ;;  %v331_v7 = vpack.c.b16 %v326_v3, %v326_v3  ;;  %v395_v8 = vpack.c.b16 %v390_v5, %v390_v5  ;;  %s604_s26 = smul.u32 12, %s204_s25  ;;  %v595_v21 = vld [vmem:[%s770_s1 + $0x58] sm:$0xff]  ;;  %v586_v26 = vld [vmem:[%s770_s1 + $0x8] sm:$0xff]  ;;  %v594_v30 = vld [vmem:[%s770_s1 + $0x50] sm:$0xff]  ;;  %vm287_vm3 = vcmask 588800   ;;  %s779_s6 = smov (!%p210_p5, %s512_s6), 3 }
  0x10   : > { %v589_v32 = vld [vmem:[%s770_s1 + $0x24] sm:$0xff]  ;;  %v629_v44 = vld [vmem:[%s771_s2] ss:$0 sm:$0xff]  ;;  %s513_s11 = sshll.u32 %s779_s6, 3 }
  0x11   : > { %v293_v9 = vsel %vm291_vm0, %v282_v6, 0  ;;  %v339_v10 = vsel %vm291_vm0, %v331_v7, 0  ;;  %v404_v11 = vsel %vm291_vm0, %v395_v8, 0  ;;  %s207_s9 = scalar_lea.vmem %s769_s0, %s604_s26  ;;  %v585_v33 = vld [vmem:[%s770_s1] sm:$0xff]  ;;  %v593_v36 = vld [vmem:[%s770_s1 + $0x48] sm:$0xff]  ;;  %s213_s13 = scalar_lea.vmem %s773_s4, %s513_s11 }
  0x12   : > { %298 = vmatpush.bf16.msra.mxu0 %v293_v9  ;;  %344 = vmatpush.bf16.msra.mxu1 %v339_v10  ;;  %v598_v15 = vld [vmem:[%s207_s9] sm:$0xff]   ;;  %v228_v16 = vld [vmem:[%s207_s9 + $0x8] sm:$0x1] }
  0x13   : > { %409 = vmatpush.bf16.msra.mxu2 %v404_v11  ;;  %v244_v17 = vunpack.c.l.b16 %v228_v16  ;;  %v251_v20 = vshll.u32 %v598_v15, 16  ;;  %v601_v23 = vld [vmem:[%s207_s9] sm:$0xf0]  ;;  %v602_v24 = vld [vmem:[%s207_s9] sm:$0xe]  ;;  %v249_v27 = vshrl.u32 %v598_v15, 16 }
  0x14   : > { %v603_v31 = vor.u32 %v602_v24, %v601_v23  ;;  %v630_v47 = vld [vmem:[%s772_s3] ss:$0 sm:$0xff] }
  0x15   : > { %v246_v22 = vpack.c.b16 %v244_v17, %v244_v17  ;;  %v253_v28 = vrot.slane %v251_v20, 1 }
  0x16   : > { %299 = vmatpush.bf16.msra.mxu0 %v592_v12  ;;  %345 = vmatpush.bf16.msra.mxu1 %v588_v13  ;;  %v370_v37 = vrot.slane %v603_v31, 1 }
  0x17   : > { %410 = vmatpush.bf16.msra.mxu2 %v596_v14  ;;  %v256_v29 = vshll.u32 %v246_v22, 16  ;;  %v254_v34 = vor.u32 %v253_v28, %v249_v27  ;;  %v371_v38 = vrot.slane %v246_v22, 1 }
  0x19   : > { %v258_v35 = vrot.slane %v256_v29, 1  ;;  %v372_v40 = vsel %vm369_vm2, %v370_v37, %v371_v38 }
  0x1a   : > { %300 = vmatpush.bf16.msra.mxu0 %v591_v18  ;;  %346 = vmatpush.bf16.msra.mxu1 %v587_v19 }
  0x1b   : > { %411 = vmatpush.bf16.msra.mxu2 %v595_v21  ;;  %v259_v39 = vsel %vm247_vm1, %v254_v34, %v258_v35 }
  0x1e   : > { %301 = vmatpush.bf16.msra.mxu0 %v590_v25  ;;  %347 = vmatpush.bf16.msra.mxu1 %v586_v26 }
  0x1f   : > { %412 = vmatpush.bf16.msra.mxu2 %v594_v30 }
  0x22   : > { %302 = vmatpush.bf16.msra.mxu0 %v589_v32  ;;  %348 = vmatpush.bf16.msra.mxu1 %v585_v33 }
  0x23   : > { %413 = vmatpush.bf16.msra.mxu2 %v593_v36 }
  0x25   : > { %539 = vmatmul.msk.bf16.vlgmr.msra.gmra.mxu0 %vm287_vm3, %v259_v39  ;;  %556 = vmatmul.msk.bf16.vlgmr.msra.gmra.mxu1 %vm287_vm3, %v598_v15 }
  0x26   : > { %582 = vmatmul.msk.bf16.vlgmr.msra.gmra.mxu2 %vm287_vm3, %v372_v40 }
  0xa2   : > { %v304_v41 = vpop.f32.mrf.mxu0  ;;  %v350_v42 = vpop.f32.mrf.mxu1 }
  0xa3   : > { %v351_v43 = vadd.f32 %v350_v42, %v304_v41 }
  0xa9   : > { %v415_v45 = vpop.f32.mrf.mxu2 }
  0xaa   : > { %v420_v46 = vadd.f32 %v415_v45, %v351_v43  ;;  %v306_v49 = vpop.f32.mrf.mxu0  ;;  %v352_v50 = vpop.f32.mrf.mxu1 }
  0xab   : > { %v353_v53 = vadd.f32 %v352_v50, %v306_v49 }
  0xac   : > { %v426_v48 = vmul.f32 %v629_v44, %v420_v46 }
  0xae   : > { %v432_v51 = vadd.f32 %v630_v47, %v426_v48 }
  0xb0   : > { %v434_v52 = vmax.f32 %v432_v51, 0.0 }
  0xb1   : > { %v417_v54 = vpop.f32.mrf.mxu2 }
  0xb2   : > { %436 = vst [vmem:[%s213_s13] sm:$0xff] %v434_v52  ;;  %v421_v55 = vadd.f32 %v417_v54, %v353_v53 }
  0xb4   : > { %v427_v56 = vmul.f32 %v629_v44, %v421_v55 }
  0xb6   : > { %v433_v57 = vadd.f32 %v630_v47, %v427_v56 }
  0xb8   : > { %v435_v58 = vmax.f32 %v433_v57, 0.0 }
  0xba   : > { %437 = vst [vmem:[%s213_s13 + $0x8] sm:$0xff] %v435_v58 }
  0xbb PF: > { %s14_s17 = sadd.s32 1, %s653_s17   ;;  %s774_s15 = smov %s649_s16 }
  0xbc   : > { %p11_p6 = scmp.ge.s32.totalorder %s14_s17, 4   ;;  %s775_s16 = smov %s777_s18 }
  0xbe   :  { %13 = sbr.rel (!%p11_p6) target bundleno = 2 (0x2), region = 68 }

</bundles_post_ra>
